<compile_context>
chip_gen: v6e
topology: v6e:2x2x1
jax: 0.10.0
libtpu: 0.0.40
codegen_flags: <defaults>
</compile_context>

<pallas_src>
from functools import partial

import jax
import jax.numpy as jnp
from jax.experimental import pallas as pl
from jax.experimental.pallas import tpu as pltpu

# --- model dimensions (from the PyTorch spec) --------------------------------
EEG_SAMPLE_LENGTH = 4      # input_size
HIDDEN1 = 8
HIDDEN2 = 10
HIDDEN3 = 8
OUTPUT1 = 4
NUM_CLASSES = 1

# (name, in_features, out_features, padded in_rows, padded out_rows, apply_relu)
# Padded row counts are the sublane-aligned activation heights used in-kernel.
LAYERS = (
    ("fc1",    EEG_SAMPLE_LENGTH, HIDDEN1,      8, 16, True),
    ("fc2",    HIDDEN1,           HIDDEN2,     16, 16, True),
    ("fc3",    HIDDEN2,           HIDDEN3,     16, 16, True),
    ("fc4",    HIDDEN3,           OUTPUT1,     16, 16, True),
    ("output", OUTPUT1,           NUM_CLASSES, 16,  8, False),
)
IN_ROWS0 = LAYERS[0][3]            # 8  -> kernel input height
IN_ONES_ROW0 = EEG_SAMPLE_LENGTH   # 4  -> row of the kernel input that holds 1.0


# --- parameter packing --------------------------------------------------------
def pack_params(params):
    """Fold each layer's (W:(out,in) torch layout, b:(out,)) into one augmented
    f32 matrix A of shape (out_rows, in_rows) such that, for an activation
    column h with h[:in_d] = features and h[in_ones_row] = 1.0:
        (A @ h)[:out_d]        = W @ features + b      (bias folded in)
        (A @ h)[out_rows - 1]  = 1.0                    (ones row; ReLU(1)=1)
        all other rows         = 0.0
    so the kernel never needs a separate bias broadcast/add."""
    packed = []
    in_ones = IN_ONES_ROW0
    for li, (name, in_d, out_d, in_rows, out_rows, _) in enumerate(LAYERS):
        w, b = params[name]
        a = jnp.zeros((out_rows, in_rows), jnp.float32)
        a = a.at[:out_d, :in_d].set(w.astype(jnp.float32))
        a = a.at[:out_d, in_ones].set(b.astype(jnp.float32))
        out_ones = out_rows - 1
        if li != len(LAYERS) - 1:          # final layer: only row 0 is consumed
            a = a.at[out_ones, in_ones].set(1.0)
        packed.append(a)
        in_ones = out_ones
    return tuple(packed)


# --- kernel -------------------------------------------------------------------
def mlp_kernel(x_ref, a1_ref, a2_ref, a3_ref, a4_ref, a5_ref, o_ref):
    """x_ref : (8, b_tile)   rows 0-3 = features, row 4 = 1.0; batch on lanes.
       a*_ref: augmented weight matrices (bias folded in), VMEM-resident.
       o_ref : (1, b_tile)   sigmoid output, lane-dense."""
    h = x_ref[...]
    w_refs = (a1_ref, a2_ref, a3_ref, a4_ref, a5_ref)
    for a_ref, (_, _, _, _, _, relu) in zip(w_refs, LAYERS):
        # One small-LHS MXU matmul per layer; bias already lives inside a_ref.
        h = jnp.dot(a_ref[...], h, preferred_element_type=jnp.float32)
        if relu:
            h = jnp.maximum(h, 0.0)        # VPU; ones row survives (relu(1)=1)
    logit = h[0:1, :]                      # row 0 of the final (8, b_tile) tile
    o_ref[...] = 1.0 / (1.0 + jnp.exp(-logit))   # exact sigmoid (EUP exp + div)


# --- wrapper ------------------------------------------------------------------
@partial(jax.jit, static_argnames=("b_tile",))
def network_forward(x, packed, *, b_tile=8192):
    """x: (batch, 4) float32, packed: pack_params(...). Returns (batch, 1) f32."""
    batch = x.shape[0]
    lane = 128
    # Guarantee >= 2 grid tiles whenever batch > 128 so v7x's two TensorCores
    # both get work under dimension_semantics=("parallel",); otherwise use the
    # (large) default tile to amortize per-grid-step overhead.  Sweep 8192-32768.
    half = pl.cdiv(batch, 2 * lane) * lane
    b_tile = max(lane, min(b_tile, half))
    batch_pad = pl.cdiv(batch, b_tile) * b_tile
    n_tiles = batch_pad // b_tile

    # Lane-major activations: features on sublanes, batch on lanes, plus one
    # row of ones (row IN_ONES_ROW0) so every bias rides inside the matmul.
    # Padded lanes (batch..batch_pad) just run the network on x=0 (finite,
    # sliced off below).  With allow_input_fusion, XLA fuses this transpose/
    # pad/concat into the kernel's input DMA instead of materializing it in HBM.
    xt = jnp.pad(x.astype(jnp.float32).T, ((0, 0), (0, batch_pad - batch)))
    xt = jnp.concatenate(
        [xt,
         jnp.ones((1, batch_pad), jnp.float32),
         jnp.zeros((IN_ROWS0 - EEG_SAMPLE_LENGTH - 1, batch_pad), jnp.float32)],
        axis=0)                                            # (8, batch_pad)

    # Weights: full-array blocks with constant index_map -> fetched once,
    # resident in VMEM across the entire grid (~40 KiB total).
    w_specs = [pl.BlockSpec(a.shape, lambda i: (0, 0)) for a in packed]

    out = pl.pallas_call(
        mlp_kernel,
        out_shape=jax.ShapeDtypeStruct((1, batch_pad), jnp.float32),
        grid_spec=pltpu.PrefetchScalarGridSpec(
            num_scalar_prefetch=0,
            grid=(n_tiles,),
            in_specs=[pl.BlockSpec((IN_ROWS0, b_tile), lambda i: (0, i))] + w_specs,
            out_specs=pl.BlockSpec((1, b_tile), lambda i: (0, i)),
        ),
        compiler_params=pltpu.CompilerParams(
            # batch tiles are independent -> split across TCs on v7x
            dimension_semantics=("parallel",),
            # only the activation operand may have its producer fused in
            allow_input_fusion=[True] + [False] * len(packed),
        ),
    )(xt, *packed)

    # PyTorch-style (batch, 1).  Callers that can consume the lane-major
    # (1, batch) slab directly should use out[:, :batch] instead (zero-copy).
    return out[:, :batch].T


# --- reference & init ---------------------------------------------------------
def init_params(key):
    """PyTorch nn.Linear default init: U[-1/sqrt(fan_in), +1/sqrt(fan_in)],
       weights stored in torch layout (out_features, in_features)."""
    params = {}
    for name, fan_in, fan_out, _, _, _ in LAYERS:
        key, kw, kb = jax.random.split(key, 3)
        bound = 1.0 / (fan_in ** 0.5)
        w = jax.random.uniform(kw, (fan_out, fan_in), jnp.float32, -bound, bound)
        b = jax.random.uniform(kb, (fan_out,), jnp.float32, -bound, bound)
        params[name] = (w, b)
    return params


def ref_forward(x, params):
    """Pure-JAX reference matching the PyTorch forward()."""
    h = x.astype(jnp.float32)
    for name, _, _, _, _, relu in LAYERS:
        w, b = params[name]
        h = h @ w.T + b
        if relu:
            h = jnp.maximum(h, 0.0)
    return jax.nn.sigmoid(h)


# TODO(synk): training-side methods (fit/predict/optimizer/CrossEntropyLoss)
# are not part of the forward pass and are not implemented here.

if __name__ == "__main__":
    key = jax.random.PRNGKey(0)
    key, kp = jax.random.split(key)
    params = init_params(kp)
    packed = pack_params(params)

    def check(batch, subkey):
        x = jax.random.normal(subkey, (batch, EEG_SAMPLE_LENGTH), dtype=jnp.float32)
        out = jax.block_until_ready(network_forward(x, packed))
        ref = ref_forward(x, params)
        assert out.shape == (batch, NUM_CLASSES)
        assert bool(jnp.all(jnp.isfinite(out)))
        assert float(jnp.max(jnp.abs(out - ref))) < 2e-3

    key, k1, k2 = jax.random.split(key, 3)
    check(8, k1)     # single-tile path (batch <= 128)
    check(384, k2)   # multi-tile path: 2 parallel grid tiles, padded batch

    print("KERNEL_OK")
</pallas_src>

<mosaic_0001>
module attributes {stable_mosaic.version = 11 : i64} {
  func.func @mlp_kernel(%arg0: i32, %arg1: memref<8x128xf32, #tpu.memory_space<vmem>>, %arg2: memref<16x8xf32, #tpu.memory_space<vmem>>, %arg3: memref<16x16xf32, #tpu.memory_space<vmem>>, %arg4: memref<16x16xf32, #tpu.memory_space<vmem>>, %arg5: memref<16x16xf32, #tpu.memory_space<vmem>>, %arg6: memref<8x16xf32, #tpu.memory_space<vmem>>, %arg7: memref<1x128xf32, #tpu.memory_space<vmem>>) attributes {dimension_semantics = [#tpu.dimension_semantics<parallel>], iteration_bounds = array<i64: 1>, scalar_prefetch = 0 : i64, scratch_operands = 0 : i64, tpu.core_type = #tpu.core_type<tc>, window_params = [{transform_indices = @transform_0, window_bounds = array<i64: 8, 128>}, {pipeline_mode = #tpu.pipeline_mode<synchronous>, transform_indices = @transform_1, window_bounds = array<i64: 16, 8>}, {pipeline_mode = #tpu.pipeline_mode<synchronous>, transform_indices = @transform_2, window_bounds = array<i64: 16, 16>}, {pipeline_mode = #tpu.pipeline_mode<synchronous>, transform_indices = @transform_3, window_bounds = array<i64: 16, 16>}, {pipeline_mode = #tpu.pipeline_mode<synchronous>, transform_indices = @transform_4, window_bounds = array<i64: 16, 16>}, {pipeline_mode = #tpu.pipeline_mode<synchronous>, transform_indices = @transform_5, window_bounds = array<i64: 8, 16>}, {transform_indices = @transform_6, window_bounds = array<i64: 1, 128>}]} {
    %c0 = arith.constant 0 : index
    %c0_0 = arith.constant 0 : index
    %0 = vector.load %arg1[%c0, %c0_0] : memref<8x128xf32, #tpu.memory_space<vmem>>, vector<8x128xf32>
    %c0_1 = arith.constant 0 : index
    %c0_2 = arith.constant 0 : index
    %1 = vector.load %arg2[%c0_1, %c0_2] : memref<16x8xf32, #tpu.memory_space<vmem>>, vector<16x8xf32>
    %cst = arith.constant dense<0.000000e+00> : vector<16x128xf32>
    %2 = tpu.matmul %1, %0, %cst {dimension_numbers = #tpu.dot_dimension_numbers<[1], [0], [0], [1], [0, 0, 1, 1], [], []>} : vector<16x8xf32>, vector<8x128xf32>, vector<16x128xf32> -> vector<16x128xf32>
    %cst_3 = arith.constant 0.000000e+00 : f32
    %3 = vector.broadcast %cst_3 : f32 to vector<16x128xf32>
    %4 = arith.maximumf %2, %3 : vector<16x128xf32>
    %c0_4 = arith.constant 0 : index
    %c0_5 = arith.constant 0 : index
    %5 = vector.load %arg3[%c0_4, %c0_5] : memref<16x16xf32, #tpu.memory_space<vmem>>, vector<16x16xf32>
    %cst_6 = arith.constant dense<0.000000e+00> : vector<16x128xf32>
    %6 = tpu.matmul %5, %4, %cst_6 {dimension_numbers = #tpu.dot_dimension_numbers<[1], [0], [0], [1], [0, 0, 1, 1], [], []>} : vector<16x16xf32>, vector<16x128xf32>, vector<16x128xf32> -> vector<16x128xf32>
    %cst_7 = arith.constant 0.000000e+00 : f32
    %7 = vector.broadcast %cst_7 : f32 to vector<16x128xf32>
    %8 = arith.maximumf %6, %7 : vector<16x128xf32>
    %c0_8 = arith.constant 0 : index
    %c0_9 = arith.constant 0 : index
    %9 = vector.load %arg4[%c0_8, %c0_9] : memref<16x16xf32, #tpu.memory_space<vmem>>, vector<16x16xf32>
    %cst_10 = arith.constant dense<0.000000e+00> : vector<16x128xf32>
    %10 = tpu.matmul %9, %8, %cst_10 {dimension_numbers = #tpu.dot_dimension_numbers<[1], [0], [0], [1], [0, 0, 1, 1], [], []>} : vector<16x16xf32>, vector<16x128xf32>, vector<16x128xf32> -> vector<16x128xf32>
    %cst_11 = arith.constant 0.000000e+00 : f32
    %11 = vector.broadcast %cst_11 : f32 to vector<16x128xf32>
    %12 = arith.maximumf %10, %11 : vector<16x128xf32>
    %c0_12 = arith.constant 0 : index
    %c0_13 = arith.constant 0 : index
    %13 = vector.load %arg5[%c0_12, %c0_13] : memref<16x16xf32, #tpu.memory_space<vmem>>, vector<16x16xf32>
    %cst_14 = arith.constant dense<0.000000e+00> : vector<16x128xf32>
    %14 = tpu.matmul %13, %12, %cst_14 {dimension_numbers = #tpu.dot_dimension_numbers<[1], [0], [0], [1], [0, 0, 1, 1], [], []>} : vector<16x16xf32>, vector<16x128xf32>, vector<16x128xf32> -> vector<16x128xf32>
    %cst_15 = arith.constant 0.000000e+00 : f32
    %15 = vector.broadcast %cst_15 : f32 to vector<16x128xf32>
    %16 = arith.maximumf %14, %15 : vector<16x128xf32>
    %c0_16 = arith.constant 0 : index
    %c0_17 = arith.constant 0 : index
    %17 = vector.load %arg6[%c0_16, %c0_17] : memref<8x16xf32, #tpu.memory_space<vmem>>, vector<8x16xf32>
    %cst_18 = arith.constant dense<0.000000e+00> : vector<8x128xf32>
    %18 = tpu.matmul %17, %16, %cst_18 {dimension_numbers = #tpu.dot_dimension_numbers<[1], [0], [0], [1], [0, 0, 1, 1], [], []>} : vector<8x16xf32>, vector<16x128xf32>, vector<8x128xf32> -> vector<8x128xf32>
    %19 = vector.extract_strided_slice %18 {offsets = [0, 0], sizes = [1, 128], strides = [1, 1]} : vector<8x128xf32> to vector<1x128xf32>
    %cst_19 = arith.constant 0.000000e+00 : f32
    %20 = vector.broadcast %cst_19 : f32 to vector<1x128xf32>
    %21 = arith.subf %20, %19 : vector<1x128xf32>
    %22 = math.exp %21 : vector<1x128xf32>
    %cst_20 = arith.constant 1.000000e+00 : f32
    %23 = vector.broadcast %cst_20 : f32 to vector<1x128xf32>
    %24 = arith.addf %23, %22 : vector<1x128xf32>
    %cst_21 = arith.constant 1.000000e+00 : f32
    %25 = vector.broadcast %cst_21 : f32 to vector<1x128xf32>
    %26 = arith.divf %25, %24 : vector<1x128xf32>
    %c0_22 = arith.constant 0 : index
    %c0_23 = arith.constant 0 : index
    %27 = vector.load %arg7[%c0_22, %c0_23] : memref<1x128xf32, #tpu.memory_space<vmem>>, vector<1x128xf32>
    tpu.vector_store %arg7[%c0_22, %c0_23], %26 {strides = array<i32>} : memref<1x128xf32, #tpu.memory_space<vmem>>, vector<1x128xf32>,
    return
  }
  func.func @transform_0(%arg0: i32) -> (i32, i32) {
    %c0_i32 = arith.constant 0 : i32
    %c0_i32_0 = arith.constant 0 : i32
    return %c0_i32, %arg0 : i32, i32
  }
  func.func @transform_1(%arg0: i32) -> (i32, i32) {
    %c0_i32 = arith.constant 0 : i32
    %c0_i32_0 = arith.constant 0 : i32
    %c0_i32_1 = arith.constant 0 : i32
    return %c0_i32, %c0_i32_0 : i32, i32
  }
  func.func @transform_2(%arg0: i32) -> (i32, i32) {
    %c0_i32 = arith.constant 0 : i32
    %c0_i32_0 = arith.constant 0 : i32
    %c0_i32_1 = arith.constant 0 : i32
    return %c0_i32, %c0_i32_0 : i32, i32
  }
  func.func @transform_3(%arg0: i32) -> (i32, i32) {
    %c0_i32 = arith.constant 0 : i32
    %c0_i32_0 = arith.constant 0 : i32
    %c0_i32_1 = arith.constant 0 : i32
    return %c0_i32, %c0_i32_0 : i32, i32
  }
  func.func @transform_4(%arg0: i32) -> (i32, i32) {
    %c0_i32 = arith.constant 0 : i32
    %c0_i32_0 = arith.constant 0 : i32
    %c0_i32_1 = arith.constant 0 : i32
    return %c0_i32, %c0_i32_0 : i32, i32
  }
  func.func @transform_5(%arg0: i32) -> (i32, i32) {
    %c0_i32 = arith.constant 0 : i32
    %c0_i32_0 = arith.constant 0 : i32
    %c0_i32_1 = arith.constant 0 : i32
    return %c0_i32, %c0_i32_0 : i32, i32
  }
  func.func @transform_6(%arg0: i32) -> (i32, i32) {
    %c0_i32 = arith.constant 0 : i32
    %c0_i32_0 = arith.constant 0 : i32
    return %c0_i32, %arg0 : i32, i32
  }
}

</mosaic_0001>

<bundles_post_ra>
// kernel: network_forward.2
= control target key start
LH: loop header
LB: loop body
LE: loop exit
PB: predicated region body
PF: predicated region fallthrough
CT: control target
= control target key end

     0   :  { %s768_s0 = inlined_call_operand.vmem [shape: f32[16,8], index: 0, kind: input, shape index: {}]   ;;  %s769_s1 = inlined_call_operand.vmem [shape: f32[16,16], index: 1, kind: input, shape index: {}]   ;;  %s770_s2 = inlined_call_operand.vmem [shape: f32[16,16], index: 2, kind: input, shape index: {}]   ;;  %s771_s3 = inlined_call_operand.hbm [shape: f32[16,16], index: 3, kind: input, shape index: {}]   ;;  %s772_s4 = inlined_call_operand.vmem [shape: f32[8,16], index: 4, kind: input, shape index: {}]   ;;  %s773_s5 = inlined_call_operand.hbm [shape: f32[4,8], index: 5, kind: input, shape index: {}]   ;;  %s774_s6 = inlined_call_operand.<no memory space> [shape: f32[], index: 6, kind: input, shape index: {}]   ;;  %s775_s7 = inlined_call_operand.<no memory space> [shape: f32[], index: 7, kind: input, shape index: {}]   ;;  %s776_s8 = inlined_call_operand.<no memory space> [shape: s32[], index: 8, kind: input, shape index: {}]   ;;  %s777_s9 = inlined_call_operand.vmem [shape: f32[8], index: 9, kind: input, shape index: {}]   ;;  %s778_s10 = inlined_call_operand.vmem [shape: f32[8], index: 10, kind: input, shape index: {}]   ;;  %s779_s11 = inlined_call_operand.vmem [shape: f32[1,128], index: 11, kind: output, shape index: {}]  }
   0x1   :  { %v16_v0 = vstv %s774_s6  ;;  %v17_v1 = vstv %s775_s7  ;;  %v18_v2 = vstv %s776_s8 }
   0x2   :  { %19 = vsyncpa [#allocation8], 0 }
   0x3   :  { %20 = vsyncpa [#allocation10], 0  ;;  %s648_s23 = smov [#allocation7]   ;;  %s649_s25 = smov [#allocation9]  }
   0x4   :  { %s27_s24 = sshll.u32 %s648_s23, 4  ;;  %s46_s26 = sshll.u32 %s649_s25, 4  ;;  %s28_s24 = int_to_ptr.vmem [resolvable:$true] %s27_s24  ;;  %s47_s26 = int_to_ptr.vmem [resolvable:$true] %s46_s26 }
   0x5   :  { %s612_s27 = scalar_lea.vmem %s28_s24, 64  ;;  %p617_p1 = scmp.lt.s32.totalorder %s28_s24, %s28_s24 }
   0x6   :  { %p613_p0 = scmp.ne.s32.totalorder %s28_s24, %s612_s27  ;;  %p618_p2 = scmp.lt.s32.totalorder %s612_s27, %s612_s27 }
   0x8   :  { %p619_p3 = por %p618_p2, %p617_p1 }
   0xa   :  { %p620_p4 = pnand %p619_p3, %p613_p0 }
   0xc   :  { %623 = shalt.err (!%p620_p4)
}
   0xd   :  { %30 = dma.hbm_to_vmem [thread:$0]  %s773_s5, 64, %s28_s24, [#allocation8]  }
   0xe   :  { %s632_s8 = scalar_lea.vmem %s47_s26, 256  ;;  %p637_p6 = scmp.lt.s32.totalorder %s47_s26, %s47_s26 }
   0xf   :  { %p633_p5 = scmp.ne.s32.totalorder %s47_s26, %s632_s8  ;;  %p638_p7 = scmp.lt.s32.totalorder %s632_s8, %s632_s8 }
  0x11   :  { %p639_p8 = por %p638_p7, %p637_p6 }
  0x13   :  { %p640_p9 = pnand %p639_p8, %p633_p5 }
  0x15   :  { %643 = shalt.err (!%p640_p9)
}
  0x16   :  { %s650_s28 = smov 128   ;;  %s651_s29 = smov 8  }
  0x17   :  { %52 = dma.hbm_to_vmem [thread:$0]  %s771_s3, 256, %s47_s26, [#allocation10], %s650_s28, %s650_s28, %s651_s29  }
  0x18   :  { %644 = dma.done.wait [#allocation8], 64  }
  0x19   :  { %645 = vsyncadd [#allocation8], 4294967232 }
  0x1a   :  { %646 = dma.done.wait [#allocation10], 256  }
  0x1b   :  { %647 = vsyncadd [#allocation10], 4294967040  ;;  %vm107_vm0 = vcmask 64512   ;;  %v76_v3 = vld [vmem:[%s778_s10] ss:$0 sm:$0xff]  ;;  %v62_v6 = vlaneseq  ;;  %v106_v17 = vld [vmem:[%s768_s0 + $0x8] sm:$0xff] }
  0x1c   :  { %78 = vbcast.lane.b32.xlu0 %v76_v3, 256  ;;  %v105_v4 = vld [vmem:[%s768_s0] sm:$0xff]  ;;  %vm193_vm4 = vcmask 130048   ;;  %v192_v23 = vld [vmem:[%s769_s1 + $0x8] sm:$0xff]  ;;  %v652_v36 = vmov 0.0   ;;  %vm653_vm5 = vmmov 0  }
  0x1d   :  { %v72_v5 = vld [vmem:[%s777_s9] ss:$0 sm:$0xff]  ;;  %563 = vmatprep.mubr.msk.f32.mxu0 %vm107_vm0, %v105_v4  ;;  %v63_v7 = vshrl.u32 %v62_v6, 7  ;;  %v68_v8 = vand.u32 127, %v62_v6  ;;  %v278_v29 = vld [vmem:[%s770_s2 + $0x8] sm:$0xff] }
  0x1e   :  { %v61_v9 = vld [vmem:[#allocation7] sm:$0xf]  ;;  %v362_v30 = vld [vmem:[#allocation9] sm:$0xff]  ;;  %v363_v35 = vld [vmem:[#allocation9 + $0x8] sm:$0xff] }
  0x1f   :  { %vm65_vm1 = vcmp.lt.s32.totalorder %v63_v7, 4  ;;  %vm70_vm2 = vcmp.lt.s32.totalorder %v68_v8, 8  ;;  %vm86_vm3 = vcmp.lt.s32.totalorder %v63_v7, %v18_v2  ;;  %v191_v18 = vld [vmem:[%s769_s1] sm:$0xff] }
  0x20   :  { %74 = vbcast.lane.b32.xlu0 %v72_v5, 256  ;;  %v66_v10 = vsel %vm65_vm1, %v61_v9, %v16_v0  ;;  %570 = vmatprep.mubr.msk.f32.mxu1 %vm193_vm4, %v191_v18  ;;  %v277_v24 = vld [vmem:[%s770_s2] sm:$0xff] }
  0x21   :  { %v71_v11 = vsel %vm70_vm2, %v66_v10, %v16_v0  ;;  %v447_v41 = vld [vmem:[%s772_s4] sm:$0xff] }
  0x22   :  { %v91_v13 = vsel %vm86_vm3, %v71_v11, %v17_v1 }
  0x8e   :  { %v79_v12 = vpop.permute.xlu0 %78 }
  0x8f   :  { %v95_v14 = vmax.f32 %v91_v13, %v79_v12 }
  0x92   :  { %v75_v15 = vpop.permute.xlu0 %74 }
  0x93   :  { %v99_v16 = vmax.f32 %v95_v14, %v75_v15 }
  0x95   :  { %561 = vmatprep.subr.mxu0 %v99_v16 }
  0x96   :  { %562 = vmatpush3.msra.mxu0 %v99_v16 }
  0x97   :  { %564 = vmatmul.mubr.msk.f32.vlgmr.msra.gmra.mxu0 %vm107_vm0, %v106_v17 }
  0x98   :  { %577 = vmatprep.mubr.msk.f32.mxu0 %vm193_vm4, %v277_v24 }
 0x157   :  { %v565_v19 = vpop.f32.mrf.mxu0 }
 0x158   :  { %v190_v20 = vmax.f32 %v565_v19, 0.0 }
 0x159   :  { %v180_v21 = vpop.f32.mrf.mxu0 }
 0x15a   :  { %v189_v22 = vmax.f32 %v180_v21, 0.0  ;;  %566 = vmatprep.subr.mxu1 %v190_v20 }
 0x15b   :  { %567 = vmatpush3.msra.mxu1 %v190_v20 }
 0x15c   :  { %568 = vmatprep.subr.mxu1 %v189_v22 }
 0x15d   :  { %569 = vmatpush3.msra.mxu1 %v189_v22 }
 0x15e   :  { %571 = vmatmul.mubr.msk.f32.vlgmr.msra.gmra.mxu1 %vm193_vm4, %v192_v23 }
 0x15f   :  { %584 = vmatprep.mubr.msk.f32.mxu1 %vm193_vm4, %v362_v30 }
 0x21e   :  { %v572_v25 = vpop.f32.mrf.mxu1 }
 0x21f   :  { %v276_v26 = vmax.f32 %v572_v25, 0.0 }
 0x220   :  { %v266_v27 = vpop.f32.mrf.mxu1 }
 0x221   :  { %v275_v28 = vmax.f32 %v266_v27, 0.0  ;;  %573 = vmatprep.subr.mxu0 %v276_v26 }
 0x222   :  { %574 = vmatpush3.msra.mxu0 %v276_v26 }
 0x223   :  { %575 = vmatprep.subr.mxu0 %v275_v28 }
 0x224   :  { %576 = vmatpush3.msra.mxu0 %v275_v28 }
 0x225   :  { %578 = vmatmul.mubr.msk.f32.vlgmr.msra.gmra.mxu0 %vm193_vm4, %v278_v29  ;;  %587 = vmatprep.subr.mxu0 %v652_v36 }
 0x226   :  { %591 = vmatprep.mubr.msk.f32.mxu0 %vm653_vm5, %v652_v36 }
 0x2e5   :  { %v579_v31 = vpop.f32.mrf.mxu0 }
 0x2e6   :  { %v361_v32 = vmax.f32 %v579_v31, 0.0 }
 0x2e7   :  { %v351_v33 = vpop.f32.mrf.mxu0 }
 0x2e8   :  { %v360_v34 = vmax.f32 %v351_v33, 0.0  ;;  %580 = vmatprep.subr.mxu1 %v361_v32 }
 0x2e9   :  { %581 = vmatpush3.msra.mxu1 %v361_v32 }
 0x2ea   :  { %582 = vmatprep.subr.mxu1 %v360_v34 }
 0x2eb   :  { %583 = vmatpush3.msra.mxu1 %v360_v34 }
 0x2ec   :  { %585 = vmatmul.mubr.msk.f32.vlgmr.msra.gmra.mxu1 %vm193_vm4, %v363_v35 }
 0x3ac   :  { %v586_v37 = vpop.f32.mrf.mxu1 }
 0x3ad   :  { %v446_v38 = vmax.f32 %v586_v37, 0.0 }
 0x3ae   :  { %v436_v39 = vpop.f32.mrf.mxu1 }
 0x3af   :  { %v445_v40 = vmax.f32 %v436_v39, 0.0  ;;  %588 = vmatpush3.msra.mxu0 %v446_v38 }
 0x3b0   :  { %589 = vmatprep.subr.mxu0 %v652_v36 }
 0x3b1   :  { %590 = vmatpush3.msra.mxu0 %v445_v40 }
 0x3b2   :  { %592 = vmatmul.mubr.msk.f32.vlgmr.msra.gmra.mxu0 %vm193_vm4, %v447_v41 }
 0x472   :  { %v517_v42 = vpop.f32.mrf.mxu0 }
 0x473   :  { %v521_v43 = vsub.f32 0.0, %v517_v42 }
 0x474   :  { %v593_v44 = vpop.f32.mrf.mxu0 }
 0x475   :  { %v522_v45 = vmul.f32 1.442695, %v521_v43 }
 0x477   :  { %600 = vpow2.f32 %v522_v45 }
 0x484   :  { %v601_v46 = vpop.eup %600 }
 0x485   :  { %v524_v47 = vadd.f32 1.0, %v601_v46 }
 0x487   :  { %602 = vrcp.f32 %v524_v47 }
 0x494   :  { %v603_v48 = vpop.eup %602 }
 0x495   :  { %527 = vst [vmem:[%s779_s11] sm:$0x1] %v603_v48 }
 0x496   :  { %532 = vsyncpa [#allocation8], 1 }
 0x497   :  { %533 = vsyncpa [#allocation10], 1 }

</bundles_post_ra>
